<compile_context>
chip_gen: v7x
topology: tpu7x:2x2x1
jax: 0.10.0
libtpu: 0.0.40
codegen_flags: <defaults>
</compile_context>

<pallas_src>
import numpy as np

import jax
import jax.numpy as jnp
from jax.experimental import pallas as pl
from jax.experimental.pallas import tpu as pltpu

# ---------------- problem sizes (small, consistent with the module) ----------
BATCH = 2
MAX_GAME_LEN = 16          # output_size[1]
EMB_DIM = 12               # output_size[2]
CHANNELS = 4
LATENT = 6
KH, KW = 3, 3

IN_FLAT = MAX_GAME_LEN * EMB_DIM      # 192  flattened input pixels (lane-dense)
HO = MAX_GAME_LEN - KH + 1            # 14   conv output height
WO = EMB_DIM - KW + 1                 # 10   conv output width
ENC_FLAT = CHANNELS * HO * WO         # 560  encoder flatten size
# decoder dense length so ConvTranspose2d output reshapes to (B,1,H,W):
DEC_LEN = (MAX_GAME_LEN * EMB_DIM) // (CHANNELS * KW) - (KH - 1)   # 14
H2, W2 = DEC_LEN + KH - 1, 1 + KW - 1                              # 16, 3
OUT_FLAT = CHANNELS * H2 * W2                                      # 192
assert OUT_FLAT == MAX_GAME_LEN * EMB_DIM


# ---------------- the single fused Pallas kernel ------------------------------
def _fused_autoencoder_kernel(x_ref,    # VMEM (B, IN_FLAT)        flattened input
                              em_ref,   # VMEM (IN_FLAT, LATENT)   Conv+Flatten+Linear folded
                              eb_ref,   # VMEM (1, LATENT)         folded encoder bias
                              dw_ref,   # VMEM (LATENT, DEC_LEN)   decoder dense weight
                              db_ref,   # VMEM (1, DEC_LEN)        decoder dense bias
                              gm_ref,   # VMEM (DEC_LEN, OUT_FLAT) ConvTranspose2d as a matrix
                              gb_ref,   # VMEM (1, OUT_FLAT)       ConvTranspose2d bias (flat)
                              o_ref):   # VMEM (B, OUT_FLAT)       output (lane-dense)
    # ---- EncoderNN: Conv2d(1->CH,3x3) -> Flatten -> Linear(560->6), all folded
    #      into one (IN_FLAT, LATENT) matrix at init; then ReLU. ----
    latent = jnp.dot(x_ref[...], em_ref[...],
                     preferred_element_type=jnp.float32) + eb_ref[...]
    latent = jnp.maximum(latent, 0.0)

    # ---- DecoderNN: Linear(LATENT -> DEC_LEN) + ReLU ----
    d = jnp.dot(latent, dw_ref[...],
                preferred_element_type=jnp.float32) + db_ref[...]
    d = jnp.maximum(d, 0.0)

    # ---- reshape(B,1,-1,1) -> ConvTranspose2d(1->CH,3x3) -> reshape(B,1,H,W) ----
    # With input spatial width 1, the transposed conv (+ final torch.reshape)
    # is exactly d @ G + gb with G/gb precomputed at init: one lane-dense store.
    o_ref[...] = (jnp.dot(d, gm_ref[...], preferred_element_type=jnp.float32)
                  + gb_ref[...]).astype(o_ref.dtype)


# ---------------- jitted forward: one pallas_call -----------------------------
@jax.jit
def autoencoder_forward(x, kp):
    B = x.shape[0]
    xk = x.reshape(B, IN_FLAT)                     # lane-dense input (free reshape)
    vmem = pltpu.MemorySpace.VMEM
    out_flat = pl.pallas_call(
        _fused_autoencoder_kernel,
        out_shape=jax.ShapeDtypeStruct((B, OUT_FLAT), jnp.float32),
        in_specs=[
            pl.BlockSpec(memory_space=vmem),   # x (B, 192)
            pl.BlockSpec(memory_space=vmem),   # folded encoder matrix
            pl.BlockSpec(memory_space=vmem),   # folded encoder bias
            pl.BlockSpec(memory_space=vmem),   # dec_w
            pl.BlockSpec(memory_space=vmem),   # dec_b
            pl.BlockSpec(memory_space=vmem),   # deconv matrix
            pl.BlockSpec(memory_space=vmem),   # deconv bias (flat)
        ],
        out_specs=pl.BlockSpec(memory_space=vmem),
    )(xk, kp["enc_mat"], kp["enc_bias"], kp["dec_w"], kp["dec_b"],
      kp["deconv_mat"], kp["deconv_bias"])
    # final torch.reshape(B, 1, max_game_len, emb_dim): flat (c,i,j) order == NCHW flatten
    return out_flat.reshape(B, 1, MAX_GAME_LEN, EMB_DIM)


# ---------------- parameter init (PyTorch layout) + one-time kernel layout ----
def init_torch_params(key):
    ks = jax.random.split(key, 8)
    return {
        # encoder: Conv2d(1 -> CHANNELS, (3,3)), then Linear(ENC_FLAT -> LATENT)
        "conv_w":   0.1 * jax.random.normal(ks[0], (CHANNELS, 1, KH, KW), jnp.float32),
        "conv_b":   0.1 * jax.random.normal(ks[1], (CHANNELS,), jnp.float32),
        "enc_w":    0.05 * jax.random.normal(ks[2], (LATENT, ENC_FLAT), jnp.float32),
        "enc_b":    0.05 * jax.random.normal(ks[3], (LATENT,), jnp.float32),
        # decoder: Linear(LATENT -> DEC_LEN), then ConvTranspose2d(1 -> CHANNELS, (3,3))
        "dec_w":    0.1 * jax.random.normal(ks[4], (DEC_LEN, LATENT), jnp.float32),
        "dec_b":    0.1 * jax.random.normal(ks[5], (DEC_LEN,), jnp.float32),
        "deconv_w": 0.1 * jax.random.normal(ks[6], (1, CHANNELS, KH, KW), jnp.float32),
        "deconv_b": 0.1 * jax.random.normal(ks[7], (CHANNELS,), jnp.float32),
    }


def prepare_kernel_params(p):
    """One-time host-side re-layout of the PyTorch-shaped params for the kernel."""
    # ---- Fold Conv2d(1->CH,3x3) + Flatten + Linear(560->LATENT) into a single
    #      linear map  latent_pre = x_flat @ E + e_bias  (no activation between
    #      the conv and the Linear in this module, so the fold is exact). ----
    cw = np.asarray(p["conv_w"], np.float64)                  # (CH, 1, KH, KW)
    cb = np.asarray(p["conv_b"], np.float64)                  # (CH,)
    ew = np.asarray(p["enc_w"], np.float64)                   # (LATENT, ENC_FLAT)
    eb = np.asarray(p["enc_b"], np.float64)                   # (LATENT,)
    ew4 = ew.reshape(LATENT, CHANNELS, HO, WO)                # NCHW-flatten order
    E = np.zeros((IN_FLAT, LATENT), np.float64)
    for c in range(CHANNELS):
        for pp in range(KH):
            for q in range(KW):
                w = cw[c, 0, pp, q]
                for i in range(HO):
                    for j in range(WO):
                        E[(i + pp) * EMB_DIM + (j + q), :] += w * ew4[:, c, i, j]
    e_bias = eb + np.einsum("c,lcij->l", cb, ew4)

    # ---- ConvTranspose2d(1->CH,(3,3),stride 1) on a (DEC_LEN,1) spatial input is
    #      the exact linear map y[b, c*H2*W2 + i*W2 + j] = sum_h d[b,h]*W[0,c,i-h,j]
    #      + b[c]; build that matrix (and the flat bias) once here. ----
    tw = np.asarray(p["deconv_w"], np.float64)                # (1, CH, KH, KW)
    tb = np.asarray(p["deconv_b"], np.float64)                # (CH,)
    G = np.zeros((DEC_LEN, OUT_FLAT), np.float64)
    gb = np.zeros((1, OUT_FLAT), np.float64)
    for c in range(CHANNELS):
        for i in range(H2):
            for j in range(W2):
                n = c * (H2 * W2) + i * W2 + j
                gb[0, n] = tb[c]
                for h in range(DEC_LEN):
                    k = i - h
                    if 0 <= k < KH:
                        G[h, n] = tw[0, c, k, j]

    return {
        "enc_mat":     jnp.asarray(E, jnp.float32),
        "enc_bias":    jnp.asarray(e_bias.reshape(1, LATENT), jnp.float32),
        "dec_w":       p["dec_w"].T,
        "dec_b":       p["dec_b"].reshape(1, DEC_LEN),
        "deconv_mat":  jnp.asarray(G, jnp.float32),
        "deconv_bias": jnp.asarray(gb, jnp.float32),
    }


# ---------------- pure-numpy reference (PyTorch semantics, float64) -----------
def reference_forward_numpy(x, p):
    x = np.asarray(x, np.float64)
    B = x.shape[0]
    cw = np.asarray(p["conv_w"], np.float64); cb = np.asarray(p["conv_b"], np.float64)
    ew = np.asarray(p["enc_w"], np.float64);  eb = np.asarray(p["enc_b"], np.float64)
    dw = np.asarray(p["dec_w"], np.float64);  db = np.asarray(p["dec_b"], np.float64)
    tw = np.asarray(p["deconv_w"], np.float64); tb = np.asarray(p["deconv_b"], np.float64)
    # Conv2d(1->CH, 3x3, stride 1, no padding)
    conv = np.zeros((B, CHANNELS, HO, WO), np.float64)
    for c in range(CHANNELS):
        conv[:, c] = cb[c]
        for pp in range(KH):
            for q in range(KW):
                conv[:, c] += x[:, 0, pp:pp + HO, q:q + WO] * cw[c, 0, pp, q]
    flat = conv.reshape(B, -1)                                   # nn.Flatten (NCHW order)
    lat = np.maximum(flat @ ew.T + eb, 0.0)                      # Linear + ReLU
    d = np.maximum(lat @ dw.T + db, 0.0)                         # Linear + ReLU
    z = d.reshape(B, 1, DEC_LEN, 1)                              # torch.reshape(B,1,-1,1)
    y = np.zeros((B, CHANNELS, H2, W2), np.float64)              # ConvTranspose2d
    for c in range(CHANNELS):
        y[:, c] = tb[c]
        for i in range(H2):
            for j in range(W2):
                for h in range(DEC_LEN):
                    k = i - h
                    if 0 <= k < KH:
                        y[:, c, i, j] += z[:, 0, h, 0] * tw[0, c, k, j]
    return y.reshape(B, 1, MAX_GAME_LEN, EMB_DIM)                # final torch.reshape


if __name__ == "__main__":
    key = jax.random.PRNGKey(0)
    k_x, k_p = jax.random.split(key)
    x = jax.random.normal(k_x, (BATCH, 1, MAX_GAME_LEN, EMB_DIM), jnp.float32)
    torch_params = init_torch_params(k_p)
    kernel_params = prepare_kernel_params(torch_params)

    out = autoencoder_forward(x, kernel_params)
    out = jax.block_until_ready(out)

    assert out.shape == (BATCH, 1, MAX_GAME_LEN, EMB_DIM), out.shape
    assert out.dtype == jnp.float32
    out_np = np.asarray(out, dtype=np.float64)
    assert np.isfinite(out_np).all()

    ref = reference_forward_numpy(x, torch_params)
    max_err = float(np.max(np.abs(out_np - ref)))
    assert max_err < 5e-3, f"max abs error vs reference: {max_err}"

    print("KERNEL_OK")
</pallas_src>

<mosaic_0001>
module attributes {stable_mosaic.version = 11 : i64} {
  func.func @_fused_autoencoder_kernel(%arg0: memref<2x192xf32, #tpu.memory_space<vmem>>, %arg1: memref<192x6xf32, #tpu.memory_space<vmem>>, %arg2: memref<1x6xf32, #tpu.memory_space<vmem>>, %arg3: memref<6x14xf32, #tpu.memory_space<vmem>>, %arg4: memref<1x14xf32, #tpu.memory_space<vmem>>, %arg5: memref<14x192xf32, #tpu.memory_space<vmem>>, %arg6: memref<1x192xf32, #tpu.memory_space<vmem>>, %arg7: memref<2x192xf32, #tpu.memory_space<vmem>>) attributes {dimension_semantics = [], scalar_prefetch = 0 : i64, scratch_operands = 0 : i64, tpu.core_type = #tpu.core_type<tc>} {
    %c0 = arith.constant 0 : index
    %c0_0 = arith.constant 0 : index
    %0 = vector.load %arg0[%c0, %c0_0] : memref<2x192xf32, #tpu.memory_space<vmem>>, vector<2x192xf32>
    %c0_1 = arith.constant 0 : index
    %c0_2 = arith.constant 0 : index
    %1 = vector.load %arg1[%c0_1, %c0_2] : memref<192x6xf32, #tpu.memory_space<vmem>>, vector<192x6xf32>
    %cst = arith.constant dense<0.000000e+00> : vector<2x6xf32>
    %2 = tpu.matmul %0, %1, %cst {dimension_numbers = #tpu.dot_dimension_numbers<[1], [0], [0], [1], [0, 0, 1, 1], [], []>} : vector<2x192xf32>, vector<192x6xf32>, vector<2x6xf32> -> vector<2x6xf32>
    %c0_3 = arith.constant 0 : index
    %c0_4 = arith.constant 0 : index
    %3 = vector.load %arg2[%c0_3, %c0_4] : memref<1x6xf32, #tpu.memory_space<vmem>>, vector<1x6xf32>
    %4 = vector.broadcast %3 : vector<1x6xf32> to vector<2x6xf32>
    %5 = arith.addf %2, %4 : vector<2x6xf32>
    %cst_5 = arith.constant 0.000000e+00 : f32
    %6 = vector.broadcast %cst_5 : f32 to vector<2x6xf32>
    %7 = arith.maximumf %5, %6 : vector<2x6xf32>
    %c0_6 = arith.constant 0 : index
    %c0_7 = arith.constant 0 : index
    %8 = vector.load %arg3[%c0_6, %c0_7] : memref<6x14xf32, #tpu.memory_space<vmem>>, vector<6x14xf32>
    %cst_8 = arith.constant dense<0.000000e+00> : vector<2x14xf32>
    %9 = tpu.matmul %7, %8, %cst_8 {dimension_numbers = #tpu.dot_dimension_numbers<[1], [0], [0], [1], [0, 0, 1, 1], [], []>} : vector<2x6xf32>, vector<6x14xf32>, vector<2x14xf32> -> vector<2x14xf32>
    %c0_9 = arith.constant 0 : index
    %c0_10 = arith.constant 0 : index
    %10 = vector.load %arg4[%c0_9, %c0_10] : memref<1x14xf32, #tpu.memory_space<vmem>>, vector<1x14xf32>
    %11 = vector.broadcast %10 : vector<1x14xf32> to vector<2x14xf32>
    %12 = arith.addf %9, %11 : vector<2x14xf32>
    %cst_11 = arith.constant 0.000000e+00 : f32
    %13 = vector.broadcast %cst_11 : f32 to vector<2x14xf32>
    %14 = arith.maximumf %12, %13 : vector<2x14xf32>
    %c0_12 = arith.constant 0 : index
    %c0_13 = arith.constant 0 : index
    %15 = vector.load %arg5[%c0_12, %c0_13] : memref<14x192xf32, #tpu.memory_space<vmem>>, vector<14x192xf32>
    %cst_14 = arith.constant dense<0.000000e+00> : vector<2x192xf32>
    %16 = tpu.matmul %14, %15, %cst_14 {dimension_numbers = #tpu.dot_dimension_numbers<[1], [0], [0], [1], [0, 0, 1, 1], [], []>} : vector<2x14xf32>, vector<14x192xf32>, vector<2x192xf32> -> vector<2x192xf32>
    %c0_15 = arith.constant 0 : index
    %c0_16 = arith.constant 0 : index
    %17 = vector.load %arg6[%c0_15, %c0_16] : memref<1x192xf32, #tpu.memory_space<vmem>>, vector<1x192xf32>
    %18 = vector.broadcast %17 : vector<1x192xf32> to vector<2x192xf32>
    %19 = arith.addf %16, %18 : vector<2x192xf32>
    %c0_17 = arith.constant 0 : index
    %c0_18 = arith.constant 0 : index
    %20 = vector.load %arg7[%c0_17, %c0_18] : memref<2x192xf32, #tpu.memory_space<vmem>>, vector<2x192xf32>
    tpu.vector_store %arg7[%c0_17, %c0_18], %19 {strides = array<i32>} : memref<2x192xf32, #tpu.memory_space<vmem>>, vector<2x192xf32>,
    return
  }
}

</mosaic_0001>

<bundles_post_ra>
// kernel: autoencoder_forward.1
= control target key start
LH: loop header
LB: loop body
LE: loop exit
PB: predicated region body
PF: predicated region fallthrough
CT: control target
= control target key end

     0   :  { %v408_v0 = vmov 0.0|0.0   ;;  %vm68_vm0 = vcmask 523264   ;;  %v409_v39 = vmov 0.0   ;;  %vm154_vm1 = vcmask 1045504   ;;  %s569_s1 = inlined_call_operand.vmem [shape: f32[192,6], index: 1, kind: input, shape index: {}]   ;;  %s570_s0 = inlined_call_operand.vmem [shape: f32[2,192], index: 0, kind: input, shape index: {}]   ;;  %s571_s3 = inlined_call_operand.vmem [shape: f32[6,14], index: 3, kind: input, shape index: {}]   ;;  %s572_s2 = inlined_call_operand.vmem [shape: f32[1,6], index: 2, kind: input, shape index: {}]   ;;  %s573_s5 = inlined_call_operand.vmem [shape: f32[14,192], index: 5, kind: input, shape index: {}]   ;;  %s574_s4 = inlined_call_operand.vmem [shape: f32[1,14], index: 4, kind: input, shape index: {}]   ;;  %s575_s6 = inlined_call_operand.vmem [shape: f32[1,192], index: 6, kind: input, shape index: {}]   ;;  %s576_s7 = inlined_call_operand.vmem [shape: f32[2,192], index: 7, kind: output, shape index: {}]  }
   0x1   :  { %361 = vmatprep.subr.bf16.mxu0 %v408_v0  ;;  %v27_v1 = vld [vmem:[%s569_s1] sm:$0xff]  ;;  %v28_v2 = vld [vmem:[%s569_s1 + $0x8] sm:$0xff]  ;;  %v29_v3 = vld [vmem:[%s569_s1 + $0x10] sm:$0xff]  ;;  %356 = vmatprep.subr.mxu1 %v409_v39  ;;  %vm410_vm2 = vmmov 0   ;;  %vm150_vm3 = vcmask 48128   ;;  %vm411_vm4 = vmmov 1   ;;  %v235_v57 = vlaneseq }
   0x2   :  { %v362_v4 = vpack.c.bf16 %v28_v2, %v27_v1  ;;  %v30_v5 = vld [vmem:[%s569_s1 + $0x18] sm:$0xff]  ;;  %v31_v7 = vld [vmem:[%s569_s1 + $0x20] sm:$0xff]  ;;  %v32_v8 = vld [vmem:[%s569_s1 + $0x28] sm:$0xff]  ;;  %358 = vmatprep.mubr.msk.f32.mxu1 %vm410_vm2, %v409_v39  ;;  %vm245_vm6 = vcmask 113664   ;;  %v412_v62 = vmov 1983009808  }
   0x3   :  { %v365_v6 = vpack.c.bf16 %v30_v5, %v29_v3  ;;  %v368_v9 = vpack.c.bf16 %v32_v8, %v31_v7  ;;  %v33_v10 = vld [vmem:[%s569_s1 + $0x30] sm:$0xff]  ;;  %v34_v11 = vld [vmem:[%s569_s1 + $0x38] sm:$0xff]  ;;  %v346_v12 = vld.sshfl [vmem:[%s570_s0] sm:$0x33 pattern:$0x76325410]  ;;  %v330_v63 = vunpack.c.l.s4 %v412_v62 }
   0x4   :  { %363 = vmatpush1.bf16.msra.mxu0 %v362_v4  ;;  %v66_v13 = vcombine.high %v346_v12, %v346_v12  ;;  %v371_v14 = vpack.c.bf16 %v34_v11, %v33_v10  ;;  %v35_v15 = vld [vmem:[%s569_s1 + $0x40] sm:$0xff]  ;;  %v36_v16 = vld [vmem:[%s569_s1 + $0x48] sm:$0xff]  ;;  %v37_v18 = vld [vmem:[%s569_s1 + $0x50] sm:$0xff]  ;;  %v236_v58 = vshrl.u32 %v235_v57, 7  ;;  %vm337_vm7 = vcmask 1041408  }
   0x5   :  { %364 = vmatprep.subr.bf16.mxu0 %v408_v0  ;;  %v374_v17 = vpack.c.bf16 %v36_v16, %v35_v15  ;;  %v38_v19 = vld [vmem:[%s569_s1 + $0x58] sm:$0xff]  ;;  %v39_v21 = vld [vmem:[%s569_s1 + $0x60] sm:$0xff]  ;;  %v40_v22 = vld [vmem:[%s569_s1 + $0x68] sm:$0xff]  ;;  %v331_v2 = vunpack.c.0.s8 %v330_v63  ;;  %vm338_vm8 = vcmask 519170  }
   0x6   :  { %347 = vmatprep.mubr.msk.f32.mxu0 %vm68_vm0, %v66_v13  ;;  %v377_v20 = vpack.c.bf16 %v38_v19, %v37_v18  ;;  %v380_v23 = vpack.c.bf16 %v40_v22, %v39_v21  ;;  %v41_v24 = vld [vmem:[%s569_s1 + $0x70] sm:$0xff]  ;;  %v42_v25 = vld [vmem:[%s569_s1 + $0x78] sm:$0xff]  ;;  %v43_v27 = vld [vmem:[%s569_s1 + $0x80] sm:$0xff]  ;;  %v237_v59 = vsub.s32 0, %v236_v58  ;;  %v241_v61 = vsub.s32 1, %v236_v58 }
   0x7   :  { %v383_v26 = vpack.c.bf16 %v42_v25, %v41_v24  ;;  %v44_v28 = vld [vmem:[%s569_s1 + $0x88] sm:$0xff]  ;;  %v45_v30 = vld [vmem:[%s569_s1 + $0x90] sm:$0xff]  ;;  %v46_v31 = vld [vmem:[%s569_s1 + $0x98] sm:$0xff]  ;;  %v334_v7 = vsub.s32 %v331_v2, %v236_v58 }
   0x8   :  { %366 = vmatpush1.bf16.msra.mxu0 %v365_v6  ;;  %v386_v29 = vpack.c.bf16 %v44_v28, %v43_v27  ;;  %v389_v32 = vpack.c.bf16 %v46_v31, %v45_v30  ;;  %v47_v33 = vld [vmem:[%s569_s1 + $0xa0] sm:$0xff]  ;;  %v48_v34 = vld [vmem:[%s569_s1 + $0xa8] sm:$0xff]  ;;  %v49_v36 = vld [vmem:[%s569_s1 + $0xb0] sm:$0xff] }
   0x9   :  { %367 = vmatprep.subr.bf16.mxu0 %v408_v0  ;;  %v392_v35 = vpack.c.bf16 %v48_v34, %v47_v33  ;;  %v50_v37 = vld [vmem:[%s569_s1 + $0xb8] sm:$0xff]  ;;  %v142_v40 = vld [vmem:[%s571_s3] sm:$0x3f]  ;;  %vm398_vm5 = vmpackc.low %vm154_vm1, %vm411_vm4 }
   0xa   :  { %v395_v38 = vpack.c.bf16 %v50_v37, %v49_v36  ;;  %357 = vmatpush3.msk.msra.mxu1 %vm154_vm1, %v142_v40  ;;  %v345_v41 = vld [vmem:[%s572_s2] ss:$0 sm:$0xff]  ;;  %v230_v46 = vld [vmem:[%s573_s5 + $0x8] sm:$0xff]  ;;  %v232_v47 = vld [vmem:[%s573_s5 + $0x18] sm:$0x3f] }
   0xb   :  { %v397_v48 = vpack.c.bf16 %v232_v47, %v230_v46  ;;  %v229_v49 = vld [vmem:[%s573_s5] sm:$0xff]  ;;  %v231_v50 = vld [vmem:[%s573_s5 + $0x10] sm:$0x3f]  ;;  %vm339_vm9 = vmor %vm338_vm8, %vm337_vm7 }
   0xc   :  { %369 = vmatpush1.bf16.msra.mxu0 %v368_v9  ;;  %v400_v51 = vpack.c.bf16 %v231_v50, %v229_v49  ;;  %v348_v52 = vld [vmem:[%s574_s4] ss:$0 sm:$0xff] }
   0xd   :  { %370 = vmatprep.subr.bf16.mxu0 %v408_v0  ;;  %399 = vmatprep.subr.msk.bf16.mxu1 %vm398_vm5, %v397_v48  ;;  %v233_v60 = vld [vmem:[%s575_s6] sm:$0x3] }
   0xe   :  { %v242_v1 = vrot.slane %v233_v60, %v241_v61 }
  0x10   :  { %372 = vmatpush1.bf16.msra.mxu0 %v371_v14 }
  0x11   :  { %373 = vmatprep.subr.bf16.mxu0 %v408_v0 }
  0x14   :  { %375 = vmatpush1.bf16.msra.mxu0 %v374_v17 }
  0x15   :  { %376 = vmatprep.subr.bf16.mxu0 %v408_v0 }
  0x18   :  { %378 = vmatpush1.bf16.msra.mxu0 %v377_v20 }
  0x19   :  { %379 = vmatprep.subr.bf16.mxu0 %v408_v0 }
  0x1c   :  { %381 = vmatpush1.bf16.msra.mxu0 %v380_v23 }
  0x1d   :  { %382 = vmatprep.subr.bf16.mxu0 %v408_v0 }
  0x20   :  { %384 = vmatpush1.bf16.msra.mxu0 %v383_v26 }
  0x21   :  { %385 = vmatprep.subr.bf16.mxu0 %v408_v0 }
  0x24   :  { %387 = vmatpush1.bf16.msra.mxu0 %v386_v29 }
  0x25   :  { %388 = vmatprep.subr.bf16.mxu0 %v408_v0 }
  0x28   :  { %390 = vmatpush1.bf16.msra.mxu0 %v389_v32 }
  0x29   :  { %391 = vmatprep.subr.bf16.mxu0 %v408_v0 }
  0x2c   :  { %393 = vmatpush1.bf16.msra.mxu0 %v392_v35 }
  0x2d   :  { %394 = vmatprep.subr.bf16.mxu0 %v408_v0  ;;  %v238_v0 = vrot.slane %v233_v60, %v237_v59 }
  0x30   :  { %396 = vmatpush1.bf16.msra.mxu0 %v395_v38 }
  0x33   :  { %136 = vmatmul.mubr.f32.vlgmr.msra.gmra.mrb[0].mxu0 %v346_v12 }
 0x106   :  { %v137_v42 = vpop.f32.mrb[0].mxu0 }
 0x107   :  { %v138_v43 = vadd.f32 %v345_v41, %v137_v42  ;;  %v139_v44 = vpop.f32.mrb[1].mxu0 }
 0x109   :  { %v141_v45 = vmax.f32 %v138_v43, 0.0 }
 0x10b   :  { %359 = vmatmul.mubr.msk.f32.vlgmr.msra.gmra.mrb[0].mxu1 %vm150_vm3, %v141_v45 }
 0x10c   :  { %319 = vmatprep.mubr.f32.mxu1 %v409_v39  ;;  %402 = vmatpush1.bf16.msk.msra.mxu1 %vm398_vm5, %v400_v51 }
 0x1de   :  { %v224_v53 = vpop.f32.mrb[0].mxu1 }
 0x1df   :  { %v225_v54 = vadd.f32 %v348_v52, %v224_v53  ;;  %v360_v55 = vpop.f32.mrb[1].mxu1 }
 0x1e1   :  { %v228_v56 = vmax.f32 %v225_v54, 0.0 }
 0x1e3   :  { %353 = vmatmul.mubr.msk.f32.vlgmr.msra.gmra.mrb[2].mxu1 %vm245_vm6, %v228_v56 }
 0x2b6   :  { %v321_v3 = vpop.f32.mrb[2].mxu1 }
 0x2b7   :  { %v322_v4 = vadd.f32 %v321_v3, %v238_v0  ;;  %v323_v5 = vpop.f32.mrb[3].mxu1 }
 0x2b8   :  { %v324_v6 = vadd.f32 %v323_v5, %v242_v1 }
 0x2ba   :  { %v328_v8 = vcombine.low %v322_v4, %v324_v6 }
 0x2bc   :  { %v335_v9 = vrot.slane %v328_v8, %v334_v7 }
 0x2be   :  { %340 = vst.msk [vmem:[%s576_s7] sm:$0xf] %vm339_vm9, %v335_v9 }

</bundles_post_ra>
